<compile_context>
chip_gen: v7x
topology: tpu7x:2x2x1
jax: 0.10.0
libtpu: 0.0.40
codegen_flags: <defaults>
</compile_context>

<pallas_src>
import jax
import jax.numpy as jnp
from jax import lax
from jax.experimental import pallas as pl
from jax.experimental.pallas import tpu as pltpu

BN_EPS = 1e-5
_VMEM_BUDGET = 10 * 1024 * 1024  # per-step tile budget; safe under v5e's 16 MiB scoped default


def _round_up(x, m):
    return (x + m - 1) // m * m


def _stats_kernel(p_ref, w_ref, stats_ref, acc_ref):
    # p_ref: (tr, K) bf16 patch tile; w_ref: (K, Cp) bf16 weight.
    # stats_ref: (8, Cp) f32 per-core output (row 0 = sum, row 1 = sum of squares).
    # acc_ref: (8, Cp) f32 VMEM scratch, resident across the reduction axis.
    i = pl.program_id(1)

    @pl.when(i == 0)
    def _():
        acc_ref[...] = jnp.zeros_like(acc_ref)

    y = jnp.dot(p_ref[...], w_ref[...], preferred_element_type=jnp.float32)  # (tr, Cp) f32
    # Row-slice adds (plain VPU accumulate) instead of a sublane-axis concatenate.
    acc_ref[0:1, :] += jnp.sum(y, axis=0, keepdims=True)
    acc_ref[1:2, :] += jnp.sum(y * y, axis=0, keepdims=True)

    @pl.when(i == pl.num_programs(1) - 1)
    def _():
        stats_ref[...] = acc_ref[...]


def _apply_kernel(p_ref, w_ref, scale_ref, shift_ref, o_ref):
    # Conv tile (bf16 MXU, f32 acc) -> folded BN (one FMA) -> ReLU -> transposed store.
    # Only the real (padded-to-8) output channels are written: channels on sublanes,
    # rows on lanes, so the store is lane-dense without the 128-channel padding.
    y = jnp.dot(p_ref[...], w_ref[...], preferred_element_type=jnp.float32)  # (tr, Cp)
    y = jnp.maximum(y * scale_ref[...] + shift_ref[...], 0.0)
    c8 = o_ref.shape[0]
    o_ref[...] = y.T[:c8, :].astype(o_ref.dtype)   # (Cp, tr) XLU transpose, slice sublanes


def single_conv_forward(x, conv_w, gamma, beta, *, tile_r=4096):
    """x: (N, Cin, H, W) f32. conv_w: (Cout, Cin, 3, 3). gamma/beta: (Cout,). Returns NCHW f32."""
    N, Cin, H, W = x.shape
    Cout = conv_w.shape[0]
    # PyTorch: Ho = floor((H + 2*1 - 3)/2) + 1
    Ho = (H - 1) // 2 + 1
    Wo = (W - 1) // 2 + 1

    # --- glue: reflect pad + im2col, directly in bf16 (single materialization) ---
    xb = x.astype(jnp.bfloat16)
    xp = jnp.pad(xb, ((0, 0), (0, 0), (1, 1), (1, 1)), mode="reflect")
    taps = [xp[:, :, kh:kh + 2 * Ho:2, kw:kw + 2 * Wo:2]
            for kh in range(3) for kw in range(3)]           # each (N, Cin, Ho, Wo)
    cols = jnp.stack(taps, axis=2)                           # (N, Cin, 9, Ho, Wo)
    cols = cols.transpose(0, 3, 4, 1, 2).reshape(N * Ho * Wo, Cin * 9)

    R, K = cols.shape                                        # K = Cin*9, kept UNPADDED
    Cp = _round_up(Cout, 128)                                # MXU lane width of the weight
    C8 = _round_up(Cout, 8)                                  # sublane width of the output

    # Row tile: big (mem-bound kernel; per-step overhead ~0.35us), multiple of 128 for
    # lane-dense transposed stores, capped by a per-step VMEM budget safe on all gens.
    row_bytes = 2 * K * 2 + 3 * Cp * 4 + 2 * C8 * 4          # cols(x2,bf16) + f32 temps + out(x2)
    tr = min(tile_r, max(128, _VMEM_BUDGET // row_bytes))
    tr = max(128, tr // 128 * 128)
    if tr >= R:
        tr = _round_up(R, 8)                                 # single tile covers all rows

    n_tiles = pl.cdiv(R, tr)
    n_cores = 2 if n_tiles >= 2 else 1                       # v7x megacore split for pass 1
    n_half = pl.cdiv(n_tiles, n_cores)
    n_tiles_p = n_cores * n_half
    Rp = n_tiles_p * tr

    # Padded rows are all-zero patches: they add 0 to the BN sums (we divide by the true
    # R) and their output columns are sliced away at the end.  Padded weight columns are
    # zero -> padded channels contribute nothing and are never stored.
    cols_p = jnp.pad(cols, ((0, Rp - R), (0, 0)))            # (Rp, K) bf16, single fused pad
    w2d = conv_w.reshape(Cout, K).T.astype(jnp.bfloat16)     # (K, Cout), order c*9 + tap
    w_p = jnp.zeros((K, Cp), jnp.bfloat16).at[:, :Cout].set(w2d)

    bytes_cols = Rp * K * 2
    bytes_w = K * Cp * 2

    # --- pass 1: per-channel sum / sum-of-squares (per-core partials, reduced below) ---
    stats_all = pl.pallas_call(
        _stats_kernel,
        out_shape=jax.ShapeDtypeStruct((n_cores, 8, Cp), jnp.float32),
        grid=(n_cores, n_half),
        in_specs=[
            pl.BlockSpec((tr, K), lambda c, i: (c * n_half + i, 0)),
            pl.BlockSpec((K, Cp), lambda c, i: (0, 0)),
        ],
        out_specs=pl.BlockSpec((None, 8, Cp), lambda c, i: (c, 0, 0)),
        scratch_shapes=[pltpu.VMEM((8, Cp), jnp.float32)],
        compiler_params=pltpu.CompilerParams(
            dimension_semantics=("parallel", "arbitrary")),
        cost_estimate=pl.CostEstimate(
            flops=2 * Rp * K * Cp, transcendentals=0,
            bytes_accessed=bytes_cols + bytes_w + n_cores * 8 * Cp * 4),
    )(cols_p, w_p)
    stats = jnp.sum(stats_all, axis=0)                       # (8, Cp): row 0 sum, row 1 sumsq

    # --- finalize BN: fold batch stats + affine params into one scale/shift (tiny, f32) ---
    r_f = jnp.float32(R)
    mean = stats[0] / r_f
    # One-pass (biased) variance; clamp guards tiny negatives from f32 cancellation.
    var = jnp.maximum(stats[1] / r_f - mean * mean, 0.0)
    inv_std = lax.rsqrt(var + BN_EPS)
    gamma_p = jnp.zeros((Cp,), jnp.float32).at[:Cout].set(gamma.astype(jnp.float32))
    beta_p = jnp.zeros((Cp,), jnp.float32).at[:Cout].set(beta.astype(jnp.float32))
    scale = (gamma_p * inv_std).reshape(1, Cp)
    shift = (beta_p - mean * gamma_p * inv_std).reshape(1, Cp)

    # --- pass 2: conv + folded BN + ReLU, independent row tiles, transposed output ---
    out_t = pl.pallas_call(
        _apply_kernel,
        out_shape=jax.ShapeDtypeStruct((C8, Rp), jnp.float32),
        grid=(n_tiles_p,),
        in_specs=[
            pl.BlockSpec((tr, K), lambda i: (i, 0)),
            pl.BlockSpec((K, Cp), lambda i: (0, 0)),
            pl.BlockSpec((1, Cp), lambda i: (0, 0)),
            pl.BlockSpec((1, Cp), lambda i: (0, 0)),
        ],
        out_specs=pl.BlockSpec((C8, tr), lambda i: (0, i)),
        compiler_params=pltpu.CompilerParams(
            dimension_semantics=("parallel",)),               # megacore shards row tiles
        cost_estimate=pl.CostEstimate(
            flops=2 * Rp * K * Cp, transcendentals=0,
            bytes_accessed=bytes_cols + bytes_w + C8 * Rp * 4 + 4 * Cp * 4),
    )(cols_p, w_p, scale, shift)

    # (Cout, N*Ho*Wo) -> NCHW: leading-axis swap only (Ho*Wo stays contiguous), much
    # cheaper than the previous last-dim channel transpose of the full tensor.
    out = out_t[:Cout, :R].reshape(Cout, N, Ho, Wo).transpose(1, 0, 2, 3)
    return out


if __name__ == "__main__":
    key = jax.random.PRNGKey(0)
    k_x, k_w = jax.random.split(key)

    N, Cin, H, W = 2, 4, 32, 32
    Cout = 8

    x = jax.random.normal(k_x, (N, Cin, H, W), dtype=jnp.float32)
    # Conv2d weight (Cout, Cin, 3, 3), bias=False. Deterministic init.
    conv_w = 0.1 * jax.random.normal(k_w, (Cout, Cin, 3, 3), dtype=jnp.float32)
    # BatchNorm2d default init: weight (gamma)=1, bias (beta)=0.
    gamma = jnp.ones((Cout,), dtype=jnp.float32)
    beta = jnp.zeros((Cout,), dtype=jnp.float32)

    # tile_r=128 -> 4 row tiles: exercises multi-tile stats accumulation, the 2-way
    # parallel stats split, and the parallel apply pass while staying lane-dense.
    out = single_conv_forward(x, conv_w, gamma, beta, tile_r=128)
    out = jax.block_until_ready(out)
    assert out.shape == (N, Cout, H // 2, W // 2)

    # pure-JAX reference (f32 conv + train-mode BN + ReLU); loose tol for bf16 MXU inputs
    xp = jnp.pad(x, ((0, 0), (0, 0), (1, 1), (1, 1)), mode="reflect")
    ref = lax.conv_general_dilated(
        xp, conv_w, window_strides=(2, 2), padding="VALID",
        dimension_numbers=("NCHW", "OIHW", "NCHW"))
    r_mean = ref.mean(axis=(0, 2, 3), keepdims=True)
    r_var = ref.var(axis=(0, 2, 3), keepdims=True)
    ref = (ref - r_mean) * lax.rsqrt(r_var + BN_EPS)
    ref = ref * gamma.reshape(1, -1, 1, 1) + beta.reshape(1, -1, 1, 1)
    ref = jnp.maximum(ref, 0.0)
    err = float(jnp.max(jnp.abs(out - ref)))
    assert err < 5e-2, f"max abs error too large: {err}"

    print("KERNEL_OK")
</pallas_src>

<mosaic_0001>
module attributes {stable_mosaic.version = 11 : i64} {
  func.func @_stats_kernel(%arg0: i32, %arg1: i32, %arg2: memref<128x36xbf16, #tpu.memory_space<vmem>>, %arg3: memref<36x128xbf16, #tpu.memory_space<vmem>>, %arg4: memref<1x8x128xf32, #tpu.memory_space<vmem>>, %arg5: memref<8x128xf32, #tpu.memory_space<vmem>>) attributes {dimension_semantics = [#tpu.dimension_semantics<parallel>, #tpu.dimension_semantics<arbitrary>], iteration_bounds = array<i64: 2, 2>, scalar_prefetch = 0 : i64, scratch_operands = 1 : i64, tpu.core_type = #tpu.core_type<tc>, window_params = [{transform_indices = @transform_0, window_bounds = array<i64: 128, 36>}, {pipeline_mode = #tpu.pipeline_mode<synchronous>, transform_indices = @transform_1, window_bounds = array<i64: 36, 128>}, {transform_indices = @transform_2, window_bounds = array<i64: 1, 8, 128>}]} {
    %c0_i32 = arith.constant 0 : i32
    %0 = arith.cmpi eq, %arg1, %c0_i32 : i32
    %1 = arith.extui %0 : i1 to i32
    %c0_i32_0 = arith.constant 0 : i32
    %2 = arith.cmpi ne, %1, %c0_i32_0 : i32
    scf.if %2 {
      %cst_14 = arith.constant 0.000000e+00 : f32
      %20 = vector.broadcast %cst_14 : f32 to vector<8x128xf32>
      %c0_15 = arith.constant 0 : index
      %c0_16 = arith.constant 0 : index
      %21 = vector.load %arg5[%c0_15, %c0_16] : memref<8x128xf32, #tpu.memory_space<vmem>>, vector<8x128xf32>
      tpu.vector_store %arg5[%c0_15, %c0_16], %20 {strides = array<i32>} : memref<8x128xf32, #tpu.memory_space<vmem>>, vector<8x128xf32>,
    } else {
    }
    %c0 = arith.constant 0 : index
    %c0_1 = arith.constant 0 : index
    %3 = vector.load %arg2[%c0, %c0_1] : memref<128x36xbf16, #tpu.memory_space<vmem>>, vector<128x36xbf16>
    %c0_2 = arith.constant 0 : index
    %c0_3 = arith.constant 0 : index
    %4 = vector.load %arg3[%c0_2, %c0_3] : memref<36x128xbf16, #tpu.memory_space<vmem>>, vector<36x128xbf16>
    %cst = arith.constant dense<0.000000e+00> : vector<128x128xf32>
    %5 = tpu.matmul %3, %4, %cst {dimension_numbers = #tpu.dot_dimension_numbers<[1], [0], [0], [1], [0, 0, 1, 1], [], []>} : vector<128x36xbf16>, vector<36x128xbf16>, vector<128x128xf32> -> vector<128x128xf32>
    %c0_4 = arith.constant 0 : index
    %c0_5 = arith.constant 0 : index
    %6 = vector.load %arg5[%c0_4, %c0_5] : memref<8x128xf32, #tpu.memory_space<vmem>>, vector<1x128xf32>
    %cst_6 = arith.constant dense<0.000000e+00> : vector<128xf32>
    %7 = vector.multi_reduction <add>, %5, %cst_6 [0] : vector<128x128xf32> to vector<128xf32>
    %8 = vector.shape_cast %7 : vector<128xf32> to vector<1x128xf32>
    %9 = arith.addf %6, %8 : vector<1x128xf32>
    %c0_7 = arith.constant 0 : index
    %c0_8 = arith.constant 0 : index
    %10 = vector.load %arg5[%c0_7, %c0_8] : memref<8x128xf32, #tpu.memory_space<vmem>>, vector<1x128xf32>
    tpu.vector_store %arg5[%c0_7, %c0_8], %9 {strides = array<i32>} : memref<8x128xf32, #tpu.memory_space<vmem>>, vector<1x128xf32>,
    %c1 = arith.constant 1 : index
    %c0_9 = arith.constant 0 : index
    %11 = vector.load %arg5[%c1, %c0_9] : memref<8x128xf32, #tpu.memory_space<vmem>>, vector<1x128xf32>
    %12 = arith.mulf %5, %5 : vector<128x128xf32>
    %cst_10 = arith.constant dense<0.000000e+00> : vector<128xf32>
    %13 = vector.multi_reduction <add>, %12, %cst_10 [0] : vector<128x128xf32> to vector<128xf32>
    %14 = vector.shape_cast %13 : vector<128xf32> to vector<1x128xf32>
    %15 = arith.addf %11, %14 : vector<1x128xf32>
    %c1_11 = arith.constant 1 : index
    %c0_12 = arith.constant 0 : index
    %16 = vector.load %arg5[%c1_11, %c0_12] : memref<8x128xf32, #tpu.memory_space<vmem>>, vector<1x128xf32>
    tpu.vector_store %arg5[%c1_11, %c0_12], %15 {strides = array<i32>} : memref<8x128xf32, #tpu.memory_space<vmem>>, vector<1x128xf32>,
    %c1_i32 = arith.constant 1 : i32
    %17 = arith.cmpi eq, %arg1, %c1_i32 : i32
    %18 = arith.extui %17 : i1 to i32
    %c0_i32_13 = arith.constant 0 : i32
    %19 = arith.cmpi ne, %18, %c0_i32_13 : i32
    scf.if %19 {
      %c0_14 = arith.constant 0 : index
      %c0_15 = arith.constant 0 : index
      %20 = vector.load %arg5[%c0_14, %c0_15] : memref<8x128xf32, #tpu.memory_space<vmem>>, vector<8x128xf32>
      %c0_16 = arith.constant 0 : index
      %c0_17 = arith.constant 0 : index
      %c0_18 = arith.constant 0 : index
      %21 = vector.load %arg4[%c0_16, %c0_17, %c0_18] : memref<1x8x128xf32, #tpu.memory_space<vmem>>, vector<1x8x128xf32>
      %22 = vector.shape_cast %21 : vector<1x8x128xf32> to vector<8x128xf32>
      %23 = vector.shape_cast %20 : vector<8x128xf32> to vector<1x8x128xf32>
      tpu.vector_store %arg4[%c0_16, %c0_17, %c0_18], %23 {strides = array<i32>} : memref<1x8x128xf32, #tpu.memory_space<vmem>>, vector<1x8x128xf32>,
    } else {
    }
    return
  }
  func.func @transform_0(%arg0: i32, %arg1: i32) -> (i32, i32) {
    %c2_i32 = arith.constant 2 : i32
    %0 = arith.muli %arg0, %c2_i32 : i32
    %1 = arith.addi %0, %arg1 : i32
    %c0_i32 = arith.constant 0 : i32
    %c0_i32_0 = arith.constant 0 : i32
    return %1, %c0_i32 : i32, i32
  }
  func.func @transform_1(%arg0: i32, %arg1: i32) -> (i32, i32) {
    %c0_i32 = arith.constant 0 : i32
    %c0_i32_0 = arith.constant 0 : i32
    %c0_i32_1 = arith.constant 0 : i32
    return %c0_i32, %c0_i32_0 : i32, i32
  }
  func.func @transform_2(%arg0: i32, %arg1: i32) -> (i32, i32, i32) {
    %c0_i32 = arith.constant 0 : i32
    %c0_i32_0 = arith.constant 0 : i32
    %c0_i32_1 = arith.constant 0 : i32
    return %arg0, %c0_i32, %c0_i32_0 : i32, i32, i32
  }
}

</mosaic_0001>

<bundles_post_ra>
// kernel: tpu_custom_call.1
= control target key start
LH: loop header
LB: loop body
LE: loop exit
PB: predicated region body
PF: predicated region fallthrough
CT: control target
= control target key end

     0   :  { %7 = vsyncpa [#allocation4], 0  ;;  %s971_s0 = inlined_call_operand.vmem [shape: bf16[512,36], index: 0, kind: input, shape index: {}]   ;;  %s972_s1 = inlined_call_operand.vmem [shape: bf16[36,128], index: 1, kind: input, shape index: {}]   ;;  %s973_s2 = inlined_call_operand.hbm [shape: f32[2,8,128], index: 2, kind: output, shape index: {}]  }
   0x1   :  { %9 = vsyncpa [#allocation4 + $0x1], 0  ;;  %s805_s9 = smov 0   ;;  %s807_s10 = smov 0  }
   0x2   :  { %s809_s11 = smov 0   ;;  %s811_s12 = smov 0  }
   0x3   :  { %s813_s13 = smov 0   ;;  %s815_s14 = smov 0  }
   0x4   :  { %s817_s15 = smov 0   ;;  %s819_s16 = smov 0  }
   0x5 LB: > { %s532_s17 = sadd.s32 4294967295, %s786_s16   ;;  %s533_s18 = sadd.s32 4294967294, %s786_s16   ;;  %s786_s16 = sphi %s819_s16, %s15_s16   ;;  %s782_s15 = sphi %s817_s15, %s982_s15   ;;  %s778_s14 = sphi %s815_s14, %s981_s14   ;;  %s774_s13 = sphi %s813_s13, %s980_s13   ;;  %s770_s12 = sphi %s811_s12, %s979_s12   ;;  %s766_s11 = sphi %s809_s11, %s978_s11   ;;  %s762_s10 = sphi %s807_s10, %s977_s10   ;;  %s758_s9 = sphi %s805_s9, %s976_s9  }
   0x6   : > { %s24_s19 = sadd.s32 1, %s778_s14  ;;  %s27_s20 = sadd.s32 1, %s782_s15 }
   0x7   : > { %p25_p0 = scmp.ge.s32.totalorder %s24_s19, 2  ;;  %p95_p1 = scmp.ne.s32.totalorder %s766_s11, %s762_s10 }
   0x8   : > { %p96_p2 = scmp.eq.s32.totalorder %s532_s17, 3  ;;  %p101_p4 = scmp.ne.s32.totalorder %s762_s10, %s758_s9 }
   0x9   : > { %s984_s19 = smov (%p25_p0, %s24_s19), 0  ;;  %s986_s20 = smov (!%p25_p0, %s27_s20), %s782_s15 }
   0xa   : > { %p854_p3 = por %p96_p2, %p95_p1  ;;  %p29_p5 = scmp.ge.s32.totalorder %s986_s20, 2 }
   0xb   : > { %p102_p6 = scmp.eq.s32.totalorder %s533_s18, 3  ;;  %p538_p7 = scmp.ge.s32.totalorder %s786_s16, 1 }
   0xc   : > { %p136_p8 = scmp.lt.s32.totalorder %s786_s16, 5  ;;  %s988_s20 = smov (%p29_p5, %s986_s20), 0 }
   0xd   : > { %p864_p9 = por %p102_p6, %p101_p4  ;;  %s82_s23 = ssub.s32 %s782_s15, %s988_s20 }
   0xe   : > { %p137_p10 = pnand %p538_p7, %p136_p8  ;;  %s85_s24 = sadd.s32 1, %s766_s11 }
   0xf   : > { %p83_p11 = scmp.eq.s32.totalorder %s82_s23, 0  ;;  %s157_s26 = sand.u32 (!%p137_p10), 1, %s762_s10  }
  0x10   : > { %140 = sbr.rel (%p137_p10) target bundleno = 337 (0x151), region = 28  ;;  %s540_s27 = sshll.u32 (!%p137_p10), %s774_s13, 1 }
  0x11   : > { %s872_s25 = scalar_select %p83_p11, %s766_s11, %s85_s24  }
  0x12   : > { %s878_s28 = sshll.u32 (!%p137_p10), %s157_s26, 3  ;;  %s161_s29 = sadd.s32 (!%p137_p10), %s770_s12, %s540_s27 }
  0x13   : > { %s541_s30 = sshll.u32 (!%p137_p10), %s161_s29, 4  ;;  %s159_s7 = scalar_lea.vmem (!%p137_p10), [#allocation3], %s878_s28 }
  0x14   : > { %p163_p12 = scmp.lt.s32.totalorder (!%p137_p10), %s541_s30, 63  ;;  %p543_p13 = scmp.ne.s32.totalorder (!%p137_p10), %s770_s12, 0 }
  0x17   : > { %s990_s30 = smov (!%p163_p12, %s541_s30), 63  ;;  %174 = sbr.rel (%p543_p13) target bundleno = 30 (0x1e), region = 32 }
  0x18   : > { %s542_s3 = sshll.u32 %s990_s30, 2  ;;  %v788_v0 = vmov (!%p543_p13), 0.0  }
  0x19   : > { %s884_s6 = scalar_lea.vmem %s971_s0, %s542_s3  ;;  %175 = vst [vmem:[#allocation2] sm:$0xff] (!%p543_p13), %v788_v0 }
  0x1e PF: > { %v681_v1 = vld [vmem:[%s972_s1] sm:$0xff]   ;;  %v682_v2 = vld [vmem:[%s972_s1 + $0x8] sm:$0xff]   ;;  %vm252_vm0 = vcmask 293888   ;;  %v683_v3 = vld [vmem:[%s972_s1 + $0x10] ss:$0 sps:$4 sm:$0x33]  }
  0x1f   : > { %579 = vmatprep.subr.bf16.mxu0 %v681_v1  ;;  %v684_v4 = vld [vmem:[%s884_s6] sm:$0xff]   ;;  %601 = vmatprep.subr.bf16.mxu1 %v681_v1  ;;  %vm277_vm1 = vcmask 1041408   ;;  %v685_v7 = vld [vmem:[%s884_s6 + $0x8] sm:$0xff]   ;;  %v686_v9 = vld [vmem:[%s884_s6 + $0x10] sm:$0xff]   ;;  %p563_p0 = scmp.ne.s32.totalorder %s770_s12, 1 }
  0x20   : > { %580 = vmatpush3.bf16.msra.mxu0 %v681_v1  ;;  %604 = vmatpush3.bf16.msra.mxu1 %v681_v1  ;;  %v688_v5 = vld [vmem:[%s884_s6 + $0x20] sm:$0xff]   ;;  %v279_v6 = vsel %vm277_vm1, %v683_v3, 0  ;;  %v689_v8 = vld [vmem:[%s884_s6 + $0x28] sm:$0xff]   ;;  %v690_v10 = vld [vmem:[%s884_s6 + $0x30] sm:$0xff]  }
  0x21   : > { %581 = vmatprep.subr.bf16.mxu0 %v682_v2  ;;  %585 = vmatprep.mubr.msk.bf16.mxu0 %vm252_vm0, %v684_v4  ;;  %v687_v11 = vld [vmem:[%s884_s6 + $0x18] sm:$0xff]  }
  0x22   : > { %602 = vmatprep.subr.bf16.mxu1 %v682_v2  ;;  %593 = vmatprep.mubr.msk.bf16.mxu1 %vm252_vm0, %v688_v5  ;;  %v691_v12 = vld [vmem:[%s884_s6 + $0x38] sm:$0xff]  }
  0x24   : > { %582 = vmatpush3.bf16.msra.mxu0 %v682_v2  ;;  %605 = vmatpush3.bf16.msra.mxu1 %v682_v2 }
  0x25   : > { %607 = vmatprep.subr.msk.bf16.mxu0 %vm277_vm1, %v683_v3  ;;  %608 = vmatprep.subr.msk.bf16.mxu1 %vm277_vm1, %v683_v3 }
  0x28   : > { %584 = vmatpush3.bf16.msra.mxu0 %v279_v6  ;;  %606 = vmatpush3.bf16.msra.mxu1 %v279_v6 }
  0x2b   : > { %586 = vmatmul.mubr.msk.bf16.vlgmr.msra.gmra.mrb[0].mxu0 %vm252_vm0, %v685_v7  ;;  %594 = vmatmul.mubr.msk.bf16.vlgmr.msra.gmra.mrb[0].mxu1 %vm252_vm0, %v689_v8 }
  0x2c   : > { %589 = vmatprep.mubr.msk.bf16.mxu0 %vm252_vm0, %v686_v9  ;;  %597 = vmatprep.mubr.msk.bf16.mxu1 %vm252_vm0, %v690_v10 }
  0x33   : > { %590 = vmatmul.mubr.msk.bf16.gmra.mrb[4].mxu0 %vm252_vm0, %v687_v11  ;;  %598 = vmatmul.mubr.msk.bf16.gmra.mrb[4].mxu1 %vm252_vm0, %v691_v12 }
  0xfe   : > { %v587_v13 = vpop.f32.mrb[0].mxu0  ;;  %v595_v14 = vpop.f32.mrb[0].mxu1 }
  0xff   : > { %v315_v15 = vpop.f32.mrb[1].mxu0  ;;  %v347_v16 = vpop.f32.mrb[1].mxu1  ;;  %v405_v24 = vmul.f32 %v587_v13, %v587_v13  ;;  %v413_v56 = vmul.f32 %v595_v14, %v595_v14 }
 0x100   : > { %v588_v17 = vpop.f32.mrb[2].mxu0  ;;  %v596_v18 = vpop.f32.mrb[2].mxu1  ;;  %v403_v21 = vmul.f32 %v315_v15, %v315_v15  ;;  %v411_v50 = vmul.f32 %v347_v16, %v347_v16 }
 0x101   : > { %v318_v19 = vpop.f32.mrb[3].mxu0  ;;  %v350_v20 = vpop.f32.mrb[3].mxu1  ;;  %v406_v27 = vmul.f32 %v588_v17, %v588_v17  ;;  %v414_v59 = vmul.f32 %v596_v18, %v596_v18 }
 0x102   : > { %v379_v22 = vadd.f32 %v318_v19, %v315_v15  ;;  %v404_v23 = vmul.f32 %v318_v19, %v318_v19  ;;  %v412_v55 = vmul.f32 %v350_v20, %v350_v20 }
 0x104   : > { %v380_v25 = vadd.f32 %v587_v13, %v379_v22  ;;  %v419_v26 = vadd.f32 %v404_v23, %v403_v21  ;;  %v402_v23 = vld [vmem:[#allocation2 + $0x1] sm:$0x1] }
 0x106   : > { %v420_v28 = vadd.f32 %v419_v26, %v405_v24  ;;  %v591_v29 = vpop.f32.mrb[4].mxu0  ;;  %v381_v30 = vadd.f32 %v588_v17, %v380_v25  ;;  %v599_v31 = vpop.f32.mrb[4].mxu1 }
 0x107   : > { %v331_v32 = vpop.f32.mrb[5].mxu0  ;;  %v363_v33 = vpop.f32.mrb[5].mxu1  ;;  %v409_v44 = vmul.f32 %v591_v29, %v591_v29  ;;  %v417_v4 = vmul.f32 %v599_v31, %v599_v31 }
 0x108   : > { %v382_v34 = vadd.f32 %v381_v30, %v331_v32  ;;  %v407_v35 = vmul.f32 %v331_v32, %v331_v32  ;;  %v421_v36 = vadd.f32 %v420_v28, %v406_v27  ;;  %v592_v37 = vpop.f32.mrb[6].mxu0  ;;  %v600_v38 = vpop.f32.mrb[6].mxu1  ;;  %v415_v62 = vmul.f32 %v363_v33, %v363_v33 }
 0x109   : > { %v334_v39 = vpop.f32.mrb[7].mxu0  ;;  %v366_v40 = vpop.f32.mrb[7].mxu1  ;;  %v410_v47 = vmul.f32 %v592_v37, %v592_v37  ;;  %v418_v7 = vmul.f32 %v600_v38, %v600_v38 }
 0x10a   : > { %v422_v41 = vadd.f32 %v421_v36, %v407_v35  ;;  %v383_v42 = vadd.f32 %v382_v34, %v334_v39  ;;  %v408_v43 = vmul.f32 %v334_v39, %v334_v39  ;;  %v416_v3 = vmul.f32 %v366_v40, %v366_v40 }
 0x10c   : > { %v384_v45 = vadd.f32 %v591_v29, %v383_v42  ;;  %v423_v46 = vadd.f32 %v422_v41, %v408_v43 }
 0x10e   : > { %v424_v48 = vadd.f32 %v423_v46, %v409_v44  ;;  %v385_v49 = vadd.f32 %v592_v37, %v384_v45 }
 0x110   : > { %v386_v51 = vadd.f32 %v385_v49, %v347_v16  ;;  %v425_v52 = vadd.f32 %v424_v48, %v410_v47 }
 0x112   : > { %v426_v53 = vadd.f32 %v425_v52, %v411_v50  ;;  %v387_v54 = vadd.f32 %v386_v51, %v350_v20  ;;  %v378_v20 = vld [vmem:[#allocation2] sm:$0x1] }
 0x114   : > { %v388_v57 = vadd.f32 %v595_v14, %v387_v54  ;;  %v427_v58 = vadd.f32 %v426_v53, %v412_v55 }
 0x116   : > { %v428_v60 = vadd.f32 %v427_v58, %v413_v56  ;;  %v389_v61 = vadd.f32 %v596_v18, %v388_v57 }
 0x118   : > { %v390_v63 = vadd.f32 %v389_v61, %v363_v33  ;;  %v429_v0 = vadd.f32 %v428_v60, %v414_v59 }
 0x11a   : > { %v430_v1 = vadd.f32 %v429_v0, %v415_v62  ;;  %v391_v2 = vadd.f32 %v390_v63, %v366_v40 }
 0x11c   : > { %v392_v5 = vadd.f32 %v599_v31, %v391_v2  ;;  %v431_v6 = vadd.f32 %v430_v1, %v416_v3 }
 0x11e   : > { %v393_v8 = vadd.f32 %v600_v38, %v392_v5  ;;  %v432_v9 = vadd.f32 %v431_v6, %v417_v4 }
 0x120   : > { %v394_v10 = vrot.slane %v393_v8, 4  ;;  %v433_v11 = vadd.f32 %v432_v9, %v418_v7 }
 0x122   : > { %v395_v12 = vadd.f32 %v394_v10, %v393_v8  ;;  %v434_v13 = vrot.slane %v433_v11, 4 }
 0x124   : > { %v396_v14 = vrot.slane %v395_v12, 2  ;;  %v435_v15 = vadd.f32 %v434_v13, %v433_v11 }
 0x126   : > { %v397_v16 = vadd.f32 %v396_v14, %v395_v12  ;;  %v436_v17 = vrot.slane %v435_v15, 2 }
 0x128   : > { %v398_v18 = vrot.slane %v397_v16, 1  ;;  %v437_v19 = vadd.f32 %v436_v17, %v435_v15 }
 0x12a   : > { %v399_v21 = vadd.f32 %v398_v18, %v397_v16  ;;  %v438_v22 = vrot.slane %v437_v19, 1  ;;  %445 = sbr.rel (%p563_p0) target bundleno = 313 (0x139), region = 36 }
 0x12c   : > { %v400_v24 = vadd.f32 %v399_v21, %v378_v20  ;;  %v439_v25 = vadd.f32 %v438_v22, %v437_v19 }
 0x12e   : > { %401 = vst [vmem:[#allocation2] sm:$0x1] %v400_v24  ;;  %v440_v26 = vadd.f32 %v439_v25, %v402_v23 }
 0x130   : > { %441 = vst [vmem:[#allocation2 + $0x1] sm:$0x1] %v440_v26 }
 0x137   : > { %v446_v27 = vld [vmem:[#allocation2] sm:$0xff] }
 0x138   : > { %447 = vst [vmem:[%s159_s7] sm:$0xff] %v446_v27 }
 0x139 PF: > { %s565_s29 = sshll.u32 %s774_s13, 7  ;;  %s462_s5 = sshll.u32 %s159_s7, 4  ;;  %s463_s5 = int_to_ptr.vmem [resolvable:$true] %s462_s5 }
 0x13a   : > { %s920_s4 = scalar_lea.hbm %s973_s2, %s565_s29  ;;  %s449_s12 = scalar_lea.sflag [#allocation4], %s157_s26 }
 0x13b   : > { %s692_s6 = scalar_lea.vmem %s463_s5, 128  ;;  %s789_s8 = smov [#allocation3]  }
 0x13c   : > { %p693_p1 = scmp.ne.s32.totalorder %s463_s5, %s692_s6  ;;  %s696_s17 = sshll.u32 %s789_s8, 4  ;;  %s697_s17 = int_to_ptr.vmem [resolvable:$false] %s696_s17 }
 0x13d   : > { %s698_s18 = scalar_lea.vmem %s697_s17, 256  ;;  %p699_p5 = scmp.lt.s32.totalorder %s463_s5, %s697_s17 }
 0x13e   : > { %p694_p2 = pnand %p693_p1, %p854_p3  ;;  %p700_p6 = scmp.lt.s32.totalorder %s698_s18, %s692_s6 }
 0x140   : > { %p695_p4 = pneg %p694_p2  ;;  %p701_p7 = por %p700_p6, %p699_p5 }
 0x142   : > { %p702_p8 = pnand %p701_p7, %p695_p4 }
 0x144   : > { %705 = shalt.err (!%p702_p8)
}
 0x145   : > { %s706_s13 = scalar_lea.hbm %s920_s4, 128  ;;  %s710_s7 = scalar_lea.hbm %s973_s2, 256 }
 0x146   : > { %p707_p10 = scmp.ne.s32.totalorder %s920_s4, %s706_s13  ;;  %p711_p13 = scmp.lt.u32.totalorder %s920_s4, %s973_s2 }
 0x147   : > { %p712_p0 = scmp.lt.u32.totalorder %s710_s7, %s706_s13  ;;  %p714_p2 = scmp.lt.u32.totalorder %s706_s13, %s920_s4 }
 0x148   : > { %p708_p11 = pnand %p707_p10, %p854_p3 }
 0x149   : > { %p713_p1 = por %p712_p0, %p711_p13 }
 0x14a   : > { %p709_p12 = pneg %p708_p11 }
 0x14b   : > { %p715_p4 = por %p714_p2, %p713_p1 }
 0x14d   : > { %p716_p5 = pnand %p715_p4, %p709_p12 }
 0x14f   : > { %719 = shalt.err (!%p716_p5)
}
 0x150   : > { %609 = dma.vmem_to_hbm [thread:$0]  (%p854_p3), %s463_s5, 128, %s920_s4, %s449_s12  }
 0x151 PF: > { %p615_p6 = scmp.ge.s32.totalorder %s786_s16, 2  ;;  %s474_s27 = sand.u32 1, %s758_s9  }
 0x152   : > { %s475_s29 = scalar_lea.sflag [#allocation4], %s474_s27 }
 0x153   : > { %p612_p7 = pnand %p615_p6, %p864_p9 }
 0x155   : > { %753 = dma.done.wait (!%p612_p7), %s475_s29, 128  }
 0x156   : > { %755 = vsyncadd (!%p612_p7), %s475_s29, 4294967168  ;;  %s15_s16 = sadd.s32 1, %s786_s16   ;;  %s976_s9 = smov %s762_s10 }
 0x157   : > { %p12_p8 = scmp.ge.s32.totalorder %s15_s16, 6   ;;  %s977_s10 = smov %s766_s11 }
 0x158   : > { %s978_s11 = smov %s872_s25  ;;  %s979_s12 = smov %s778_s14 }
 0x159   : > { %s980_s13 = smov %s782_s15  ;;  %s981_s14 = smov %s984_s19 }
 0x15a   : > { %s982_s15 = smov %s988_s20  ;;  %14 = sbr.rel (!%p12_p8) target bundleno = 5 (0x5), region = 71 }
 0x161   :  { %480 = vsyncpa [#allocation4], 1 }
 0x162   :  { %482 = vsyncpa [#allocation4 + $0x1], 1 }

</bundles_post_ra>
